<compile_context>
chip_gen: v6e
topology: v6e:2x2x1
jax: 0.10.0
libtpu: 0.0.40
codegen_flags: <defaults>
</compile_context>

<pallas_src>
import functools

import jax
import jax.numpy as jnp
from jax import lax
from jax.experimental import pallas as pl
from jax.experimental.pallas import tpu as pltpu


EPS = 1e-6


# --------------------------------------------------------------------------
# Generation-aware VMEM budget.
# --------------------------------------------------------------------------
@functools.lru_cache(maxsize=None)
def _vmem_limit_bytes():
    cap = 64 * 1024 * 1024  # conservative fallback (works on every generation)
    try:
        info = pltpu.get_tpu_info()
        cap = int(getattr(info, "vmem_capacity_bytes", cap))
    except Exception:
        pass
    return min(int(cap * 0.8), 100 * 1024 * 1024)


# --------------------------------------------------------------------------
# Single-buffering of grid-invariant operands.  Probed once at IMPORT time,
# outside any jit trace (the previous lazy probe ConcretizationError'd under
# jit and permanently disabled itself).
# --------------------------------------------------------------------------
def _probe_single_buffering():
    if not hasattr(pl, "Buffered"):
        return None

    def _copy_kernel(x_ref, o_ref):
        o_ref[...] = x_ref[...]

    try:
        x = jnp.arange(8 * 128, dtype=jnp.float32).reshape(8, 128)
        out = pl.pallas_call(
            _copy_kernel,
            out_shape=jax.ShapeDtypeStruct((8, 128), jnp.float32),
            grid=(2,),
            in_specs=[pl.BlockSpec((8, 128), lambda i: (0, 0),
                                   pipeline_mode=pl.Buffered(1))],
            out_specs=pl.BlockSpec((8, 128), lambda i: (0, 0)),
        )(x)
        out = jax.block_until_ready(out)
        if bool(jnp.all(out == x)):
            return pl.Buffered(1)
    except Exception:
        pass
    return None


_SINGLE_BUFFER = _probe_single_buffering()


def _const_spec(shape):
    """BlockSpec for a grid-invariant operand (single-buffered if supported)."""
    imap = lambda *_: (0,) * len(shape)
    if _SINGLE_BUFFER is None:
        return pl.BlockSpec(shape, imap)
    return pl.BlockSpec(shape, imap, pipeline_mode=_SINGLE_BUFFER)


# --------------------------------------------------------------------------
# Tile selection / validation helpers.
# --------------------------------------------------------------------------
def _pick_tile(n, target, align):
    """Largest divisor of n that is <= target and a multiple of align.

    If no aligned divisor exists, falls back to the full extent n (the VMEM
    fit check below then raises a clear error instead of a compile failure).
    """
    for d in range(min(n, target), 0, -1):
        if n % d == 0 and d % align == 0:
            return d
    return n


def _validate_tile(name, t, n, align):
    if t <= 0 or n % t != 0:
        raise ValueError(f"{name}={t} must be a positive divisor of N={n}")
    if t != n and t % align != 0:
        raise ValueError(f"{name}={t} must be a multiple of {align} (or equal N={n})")


def _check_vmem(label, est_bytes, budget):
    if est_bytes > budget:
        raise ValueError(
            f"{label}: estimated VMEM footprint {est_bytes / 2**20:.1f} MiB exceeds "
            f"the budget {budget / 2**20:.1f} MiB. Use smaller tiles (tq/ts multiples "
            f"of 8, tk/tn multiples of 128) or pad N to an alignable size.")


# --------------------------------------------------------------------------
# Kernel 1: GroupNorm statistics, tiled over N (reduction axis last).
# Grid: (batch, n_stat_tiles).
# --------------------------------------------------------------------------
def gn_stats_kernel(x_ref, amat_ref, mean_ref, inv_ref, sum_sc, sq_sc):
    t = pl.program_id(1)

    @pl.when(t == 0)
    def _init():
        sum_sc[...] = jnp.zeros_like(sum_sc)
        sq_sc[...] = jnp.zeros_like(sq_sc)

    x = x_ref[0]                                             # (ts, C) f32
    sum_sc[...] += jnp.sum(x, axis=0, keepdims=True)         # (1, C)
    sq_sc[...] += jnp.sum(x * x, axis=0, keepdims=True)      # (1, C)

    @pl.when(t == pl.num_programs(1) - 1)
    def _final():
        # group-average the per-channel totals with one small matmul
        mean = jnp.dot(sum_sc[...], amat_ref[...],
                       preferred_element_type=jnp.float32)   # (1, C)
        ex2 = jnp.dot(sq_sc[...], amat_ref[...],
                      preferred_element_type=jnp.float32)    # (1, C)
        var = jnp.maximum(ex2 - mean * mean, 0.0)
        mean_ref[0] = mean
        inv_ref[0] = lax.rsqrt(var + EPS)


# --------------------------------------------------------------------------
# Kernel 2: GroupNorm affine + K/V 1x1 projections (tiled over rows).
# K is stored pre-transposed as (B, C, N) bf16 so the attention kernel's
# q@k^T is a plain NN matmul (no per-kv-step transpose on the hot loop).
# --------------------------------------------------------------------------
def kv_proj_kernel(x_ref, mean_ref, inv_ref, gamma_ref, beta_ref,
                   wk_ref, bk_ref, wv_ref, bv_ref,
                   kT_out_ref, v_out_ref):
    x = x_ref[0]                                             # (tn, C) f32
    h = (x - mean_ref[0]) * inv_ref[0] * gamma_ref[...] + beta_ref[...]
    hb = h.astype(jnp.bfloat16)                              # bf16 MXU operands
    k = jnp.dot(hb, wk_ref[...], preferred_element_type=jnp.float32) + bk_ref[...]
    v = jnp.dot(hb, wv_ref[...], preferred_element_type=jnp.float32) + bv_ref[...]
    kT_out_ref[0] = k.T.astype(jnp.bfloat16)                 # (C, tn) bf16
    v_out_ref[0] = v.astype(jnp.bfloat16)                    # (tn, C) bf16


# --------------------------------------------------------------------------
# Kernel 3: flash-style attention + proj_out + residual.
# Grid: (batch, n_query_tiles, n_kv_tiles); kv axis is the (last) reduction.
# When tk == N the K/V blocks depend only on the batch index, so they are
# fetched once per batch and stay VMEM-resident across all query tiles.
# --------------------------------------------------------------------------
def flash_attn_kernel(xq_ref, kT_ref, v_ref, mean_ref, inv_ref,
                      gamma_ref, beta_ref, wq_ref, bq_ref, wp_ref, bp_ref,
                      o_ref, q_sc, m_sc, l_sc, acc_sc):
    ki = pl.program_id(2)
    nk = pl.num_programs(2)

    @pl.when(ki == 0)
    def _init():
        # Q for this query tile: GroupNorm + (pre-scaled) 1x1 conv, done once.
        xq = xq_ref[0]                                       # (tq, C) f32
        hq = (xq - mean_ref[0]) * inv_ref[0] * gamma_ref[...] + beta_ref[...]
        q = jnp.dot(hq.astype(jnp.bfloat16), wq_ref[...],
                    preferred_element_type=jnp.float32) + bq_ref[...]
        q_sc[...] = q.astype(jnp.bfloat16)
        m_sc[...] = jnp.full_like(m_sc, -jnp.inf)
        l_sc[...] = jnp.zeros_like(l_sc)
        acc_sc[...] = jnp.zeros_like(acc_sc)

    kT = kT_ref[0]                                           # (C, tk) bf16
    v = v_ref[0]                                             # (tk, C) bf16

    s = jnp.dot(q_sc[...], kT, preferred_element_type=jnp.float32)  # (tq, tk)

    m_prev = m_sc[...]
    m_new = jnp.maximum(m_prev, jnp.max(s, axis=-1, keepdims=True))
    alpha = jnp.exp(m_prev - m_new)                          # f32 softmax math
    p = jnp.exp(s - m_new)
    l_sc[...] = alpha * l_sc[...] + jnp.sum(p, axis=-1, keepdims=True)
    acc_sc[...] = alpha * acc_sc[...] + jnp.dot(
        p.astype(jnp.bfloat16), v, preferred_element_type=jnp.float32)
    m_sc[...] = m_new

    @pl.when(ki == nk - 1)
    def _final():
        o = acc_sc[...] / l_sc[...]          # exact divide, once per query tile
        o = jnp.dot(o.astype(jnp.bfloat16), wp_ref[...],
                    preferred_element_type=jnp.float32) + bp_ref[...]
        o_ref[0] = xq_ref[0] + o                             # residual (f32)


# --------------------------------------------------------------------------
# Wrappers.
# --------------------------------------------------------------------------
def _prep_params(params, c):
    """PyTorch-shaped params -> lane-friendly, bf16 weights, 1/sqrt(C) folded."""
    scale = float(c) ** (-0.5)

    def t(wconv):   # (C_out, C_in, 1, 1) -> (C_in, C_out)
        return jnp.asarray(wconv, jnp.float32)[:, :, 0, 0].T

    gamma = jnp.asarray(params["gamma"], jnp.float32).reshape(1, c)
    beta = jnp.asarray(params["beta"], jnp.float32).reshape(1, c)
    wq = (t(params["wq"]) * scale).astype(jnp.bfloat16)      # scale folded in
    bq = (jnp.asarray(params["bq"], jnp.float32) * scale).reshape(1, c)
    wk = t(params["wk"]).astype(jnp.bfloat16)
    bk = jnp.asarray(params["bk"], jnp.float32).reshape(1, c)
    wv = t(params["wv"]).astype(jnp.bfloat16)
    bv = jnp.asarray(params["bv"], jnp.float32).reshape(1, c)
    wp = t(params["wp"]).astype(jnp.bfloat16)
    bp = jnp.asarray(params["bp"], jnp.float32).reshape(1, c)
    return dict(gamma=gamma, beta=beta, wq=wq, bq=bq, wk=wk, bk=bk,
                wv=wv, bv=bv, wp=wp, bp=bp)


def attn_block_bnc(x, params, *, num_groups=32, tq=None, tk=None, tn=None, ts=None):
    """Channels-last AttnBlock.  x: (B, N, C) float32, N = H*W."""
    b, n, c = x.shape
    if c % num_groups != 0:
        raise ValueError(f"C={c} must be divisible by num_groups={num_groups}")
    cs = c // num_groups
    x = x.astype(jnp.float32)

    p = _prep_params(params, c)
    vmem_limit = _vmem_limit_bytes()

    # group-averaging matrix: amat[i, j] = 1/(N*cs) if same group else 0
    group_id = jnp.arange(c) // cs
    amat = ((group_id[:, None] == group_id[None, :]).astype(jnp.float32)
            / jnp.float32(n * cs))

    # ---- tile selection ----------------------------------------------------
    ts = _pick_tile(n, 1024, 8) if ts is None else ts            # stats rows
    tn = _pick_tile(n, 1024, 128) if tn is None else tn          # kv-proj rows

    # K/V residency decision: double-buffered bf16 K+V per batch vs. budget.
    kv_resident_bytes = 2 * (2 * n * c * 2)
    resident = kv_resident_bytes <= vmem_limit // 2
    if tk is None:
        tk = n if resident else _pick_tile(n, 1024, 128)
    if tq is None:
        # resident K/V: tq=512 is plenty; streaming: raise AI with tq=1024.
        tq = _pick_tile(n, 512 if tk == n else 1024, 8)

    _validate_tile("ts", ts, n, 8)
    _validate_tile("tn", tn, n, 128)
    _validate_tile("tk", tk, n, 128)
    _validate_tile("tq", tq, n, 8)

    # ---- clear-error VMEM fit checks (rough, double-buffering included) ----
    stats_est = 2 * ts * c * 4 + c * c * 4 + 12 * c * 4
    kvproj_est = 2 * tn * c * 4 + 2 * 2 * tn * c * 2 + 2 * c * c * 2 + 12 * c * 4
    flash_est = (2 * 2 * tq * c * 4                      # x in + out (f32, 2-buf)
                 + 2 * (c * tk * 2 + tk * c * 2)         # K^T + V (bf16, 2-buf)
                 + tq * c * 2 + tq * c * 4 + 4 * tq * 4  # q/acc/m/l scratch
                 + 3 * c * c * 2 + 16 * c * 4)           # weights + vectors
    _check_vmem("GroupNorm stats kernel", stats_est, vmem_limit)
    _check_vmem("K/V projection kernel", kvproj_est, vmem_limit)
    _check_vmem("flash attention kernel", flash_est, vmem_limit)

    # ---- 1) GroupNorm statistics (tiled over N, reduction axis last) ------
    mean, inv = pl.pallas_call(
        gn_stats_kernel,
        out_shape=(jax.ShapeDtypeStruct((b, 1, c), jnp.float32),
                   jax.ShapeDtypeStruct((b, 1, c), jnp.float32)),
        grid=(b, n // ts),
        in_specs=[pl.BlockSpec((1, ts, c), lambda i, t: (i, t, 0)),
                  _const_spec((c, c))],
        out_specs=(pl.BlockSpec((1, 1, c), lambda i, t: (i, 0, 0)),
                   pl.BlockSpec((1, 1, c), lambda i, t: (i, 0, 0))),
        scratch_shapes=[pltpu.VMEM((1, c), jnp.float32),
                        pltpu.VMEM((1, c), jnp.float32)],
        compiler_params=pltpu.CompilerParams(
            dimension_semantics=("parallel", "arbitrary"),
            vmem_limit_bytes=vmem_limit),
    )(x, amat)

    # ---- 2) K/V projections (K stored transposed, bf16 outputs) -----------
    kT_bcn, v_bnc = pl.pallas_call(
        kv_proj_kernel,
        out_shape=(jax.ShapeDtypeStruct((b, c, n), jnp.bfloat16),
                   jax.ShapeDtypeStruct((b, n, c), jnp.bfloat16)),
        grid=(b, n // tn),
        in_specs=[
            pl.BlockSpec((1, tn, c), lambda i, j: (i, j, 0)),   # x
            pl.BlockSpec((1, 1, c), lambda i, j: (i, 0, 0)),    # mean
            pl.BlockSpec((1, 1, c), lambda i, j: (i, 0, 0)),    # inv
            _const_spec((1, c)), _const_spec((1, c)),           # gamma, beta
            _const_spec((c, c)), _const_spec((1, c)),           # wk, bk
            _const_spec((c, c)), _const_spec((1, c)),           # wv, bv
        ],
        out_specs=(pl.BlockSpec((1, c, tn), lambda i, j: (i, 0, j)),
                   pl.BlockSpec((1, tn, c), lambda i, j: (i, j, 0))),
        compiler_params=pltpu.CompilerParams(
            dimension_semantics=("parallel", "parallel"),
            vmem_limit_bytes=vmem_limit),
    )(x, mean, inv, p["gamma"], p["beta"], p["wk"], p["bk"], p["wv"], p["bv"])

    # ---- 3) flash attention + proj_out + residual --------------------------
    # TODO(synk): optional fp8 K/V (+ per-tile scales) on v7x would halve the
    # K/V footprint/traffic further; needs accuracy validation first.
    out = pl.pallas_call(
        flash_attn_kernel,
        out_shape=jax.ShapeDtypeStruct((b, n, c), jnp.float32),
        grid=(b, n // tq, n // tk),
        in_specs=[
            pl.BlockSpec((1, tq, c), lambda i, j, r: (i, j, 0)),   # x (q rows)
            pl.BlockSpec((1, c, tk), lambda i, j, r: (i, 0, r)),   # K^T
            pl.BlockSpec((1, tk, c), lambda i, j, r: (i, r, 0)),   # V
            pl.BlockSpec((1, 1, c), lambda i, j, r: (i, 0, 0)),    # mean
            pl.BlockSpec((1, 1, c), lambda i, j, r: (i, 0, 0)),    # inv
            _const_spec((1, c)), _const_spec((1, c)),              # gamma, beta
            _const_spec((c, c)), _const_spec((1, c)),              # wq*, bq*
            _const_spec((c, c)), _const_spec((1, c)),              # wp, bp
        ],
        out_specs=pl.BlockSpec((1, tq, c), lambda i, j, r: (i, j, 0)),
        scratch_shapes=[pltpu.VMEM((tq, c), jnp.bfloat16),   # cached Q tile
                        pltpu.VMEM((tq, 1), jnp.float32),    # running max
                        pltpu.VMEM((tq, 1), jnp.float32),    # running denom
                        pltpu.VMEM((tq, c), jnp.float32)],   # accumulator
        compiler_params=pltpu.CompilerParams(
            dimension_semantics=("parallel", "parallel", "arbitrary"),
            vmem_limit_bytes=vmem_limit),
    )(x, kT_bcn, v_bnc, mean, inv, p["gamma"], p["beta"],
      p["wq"], p["bq"], p["wp"], p["bp"])

    return out


def attn_block(x_nchw, params, *, num_groups=32, tq=None, tk=None, tn=None, ts=None):
    """NCHW adapter matching the PyTorch module interface.

    Prefer attn_block_bnc in channels-last models: the two full-tensor layout
    transposes below are pure extra HBM traffic.
    # TODO(synk): if NCHW input is unavoidable, fold the layout change into
    # kernels 1/2 by block-spec'ing (B, C, H, W) and transposing per tile.
    """
    b, c, h, w = x_nchw.shape
    x = jnp.transpose(x_nchw, (0, 2, 3, 1)).reshape(b, h * w, c)
    out = attn_block_bnc(x, params, num_groups=num_groups,
                         tq=tq, tk=tk, tn=tn, ts=ts)
    return jnp.transpose(out.reshape(b, h, w, c), (0, 3, 1, 2))


# --------------------------------------------------------------------------
# Pure-JAX reference (mirrors the PyTorch forward exactly, NCHW, f32).
# --------------------------------------------------------------------------
def ref_attn_block(x, params, num_groups=32):
    b, c, hh, ww = x.shape
    cs = c // num_groups
    xg = x.reshape(b, num_groups, cs, hh, ww)
    mean = xg.mean(axis=(2, 3, 4), keepdims=True)
    var = xg.var(axis=(2, 3, 4), keepdims=True)
    h_ = ((xg - mean) / jnp.sqrt(var + EPS)).reshape(b, c, hh, ww)
    h_ = h_ * params["gamma"].reshape(1, c, 1, 1) + params["beta"].reshape(1, c, 1, 1)

    def conv1x1(t, wconv, bconv):
        return (jnp.einsum("bchw,oc->bohw", t, wconv[:, :, 0, 0])
                + bconv.reshape(1, c, 1, 1))

    q = conv1x1(h_, params["wq"], params["bq"])
    k = conv1x1(h_, params["wk"], params["bk"])
    v = conv1x1(h_, params["wv"], params["bv"])
    n = hh * ww
    q = q.reshape(b, c, n).transpose(0, 2, 1)
    k = k.reshape(b, c, n)
    w_ = jnp.einsum("bqc,bck->bqk", q, k) * (float(c) ** -0.5)
    w_ = jax.nn.softmax(w_, axis=2)
    v = v.reshape(b, c, n)
    h_ = jnp.einsum("bcn,bqn->bcq", v, w_).reshape(b, c, hh, ww)
    h_ = conv1x1(h_, params["wp"], params["bp"])
    return x + h_


if __name__ == "__main__":
    B, C, H, W = 2, 64, 16, 16   # C must be divisible by GroupNorm's 32 groups

    key = jax.random.PRNGKey(0)
    keys = jax.random.split(key, 7)
    x = jax.random.normal(keys[0], (B, C, H, W), dtype=jnp.float32)

    def conv_init(k):
        kw, kb = jax.random.split(k)
        wgt = 0.1 * jax.random.normal(kw, (C, C, 1, 1), dtype=jnp.float32)
        bias = 0.05 * jax.random.normal(kb, (C,), dtype=jnp.float32)
        return wgt, bias

    wq, bq = conv_init(keys[1])
    wk, bk = conv_init(keys[2])
    wv, bv = conv_init(keys[3])
    wp, bp = conv_init(keys[4])
    gamma = 1.0 + 0.1 * jax.random.normal(keys[5], (C,), dtype=jnp.float32)
    beta = 0.1 * jax.random.normal(keys[6], (C,), dtype=jnp.float32)

    params = dict(gamma=gamma, beta=beta,
                  wq=wq, bq=bq, wk=wk, bk=bk, wv=wv, bv=bv, wp=wp, bp=bp)

    ref = jax.block_until_ready(ref_attn_block(x, params))

    # 1) explicit small tiles: exercises the (batch, q-tile, kv-tile) grid,
    #    the online-softmax accumulation and the tiled GroupNorm stats.
    out = jax.block_until_ready(attn_block(x, params, tq=64, tk=128, tn=128, ts=64))
    assert out.shape == (B, C, H, W)
    err = float(jnp.max(jnp.abs(out - ref)))
    assert jnp.allclose(out, ref, atol=2e-2, rtol=2e-2), err

    # 2) auto tiling: exercises the VMEM-resident K/V fast path.
    out2 = jax.block_until_ready(attn_block(x, params))
    err2 = float(jnp.max(jnp.abs(out2 - ref)))
    assert jnp.allclose(out2, ref, atol=2e-2, rtol=2e-2), err2

    print("KERNEL_OK")
</pallas_src>

<mosaic_0001>
module attributes {stable_mosaic.version = 11 : i64} {
  func.func @_copy_kernel(%arg0: i32, %arg1: memref<8x128xf32, #tpu.memory_space<vmem>>, %arg2: memref<8x128xf32, #tpu.memory_space<vmem>>) attributes {dimension_semantics = [#tpu.dimension_semantics<arbitrary>], iteration_bounds = array<i64: 2>, scalar_prefetch = 0 : i64, scratch_operands = 0 : i64, tpu.core_type = #tpu.core_type<tc>, window_params = [{pipeline_mode = #tpu.pipeline_mode<synchronous>, transform_indices = @transform_0, window_bounds = array<i64: 8, 128>}, {pipeline_mode = #tpu.pipeline_mode<synchronous>, transform_indices = @transform_1, window_bounds = array<i64: 8, 128>}]} {
    %c0 = arith.constant 0 : index
    %c0_0 = arith.constant 0 : index
    %0 = vector.load %arg1[%c0, %c0_0] : memref<8x128xf32, #tpu.memory_space<vmem>>, vector<8x128xf32>
    %c0_1 = arith.constant 0 : index
    %c0_2 = arith.constant 0 : index
    %1 = vector.load %arg2[%c0_1, %c0_2] : memref<8x128xf32, #tpu.memory_space<vmem>>, vector<8x128xf32>
    tpu.vector_store %arg2[%c0_1, %c0_2], %0 {strides = array<i32>} : memref<8x128xf32, #tpu.memory_space<vmem>>, vector<8x128xf32>,
    return
  }
  func.func @transform_0(%arg0: i32) -> (i32, i32) {
    %c0_i32 = arith.constant 0 : i32
    %c0_i32_0 = arith.constant 0 : i32
    %c0_i32_1 = arith.constant 0 : i32
    return %c0_i32, %c0_i32_0 : i32, i32
  }
  func.func @transform_1(%arg0: i32) -> (i32, i32) {
    %c0_i32 = arith.constant 0 : i32
    %c0_i32_0 = arith.constant 0 : i32
    %c0_i32_1 = arith.constant 0 : i32
    return %c0_i32, %c0_i32_0 : i32, i32
  }
}

module attributes {stable_mosaic.version = 11 : i64} {
  func.func @gn_stats_kernel(%arg0: i32, %arg1: i32, %arg2: memref<1x64x64xf32, #tpu.memory_space<vmem>>, %arg3: memref<64x64xf32, #tpu.memory_space<vmem>>, %arg4: memref<1x1x64xf32, #tpu.memory_space<vmem>>, %arg5: memref<1x1x64xf32, #tpu.memory_space<vmem>>, %arg6: memref<1x64xf32, #tpu.memory_space<vmem>>, %arg7: memref<1x64xf32, #tpu.memory_space<vmem>>) attributes {dimension_semantics = [#tpu.dimension_semantics<parallel>, #tpu.dimension_semantics<arbitrary>], iteration_bounds = array<i64: 2, 4>, scalar_prefetch = 0 : i64, scratch_operands = 2 : i64, tpu.core_type = #tpu.core_type<tc>, window_params = [{transform_indices = @transform_0, window_bounds = array<i64: 1, 64, 64>}, {pipeline_mode = #tpu.pipeline_mode<synchronous>, transform_indices = @transform_1, window_bounds = array<i64: 64, 64>}, {transform_indices = @transform_2, window_bounds = array<i64: 1, 1, 64>}, {transform_indices = @transform_3, window_bounds = array<i64: 1, 1, 64>}]} {
    %c0_i32 = arith.constant 0 : i32
    %0 = arith.cmpi eq, %arg1, %c0_i32 : i32
    %1 = arith.extui %0 : i1 to i32
    %c0_i32_0 = arith.constant 0 : i32
    %2 = arith.cmpi ne, %1, %c0_i32_0 : i32
    scf.if %2 {
      %cst_13 = arith.constant 0.000000e+00 : f32
      %19 = vector.broadcast %cst_13 : f32 to vector<1x64xf32>
      %c0_14 = arith.constant 0 : index
      %c0_15 = arith.constant 0 : index
      %20 = vector.load %arg6[%c0_14, %c0_15] : memref<1x64xf32, #tpu.memory_space<vmem>>, vector<1x64xf32>
      tpu.vector_store %arg6[%c0_14, %c0_15], %19 {strides = array<i32>} : memref<1x64xf32, #tpu.memory_space<vmem>>, vector<1x64xf32>,
      %cst_16 = arith.constant 0.000000e+00 : f32
      %21 = vector.broadcast %cst_16 : f32 to vector<1x64xf32>
      %c0_17 = arith.constant 0 : index
      %c0_18 = arith.constant 0 : index
      %22 = vector.load %arg7[%c0_17, %c0_18] : memref<1x64xf32, #tpu.memory_space<vmem>>, vector<1x64xf32>
      tpu.vector_store %arg7[%c0_17, %c0_18], %21 {strides = array<i32>} : memref<1x64xf32, #tpu.memory_space<vmem>>, vector<1x64xf32>,
    } else {
    }
    %c0 = arith.constant 0 : index
    %c0_1 = arith.constant 0 : index
    %c0_2 = arith.constant 0 : index
    %3 = vector.load %arg2[%c0, %c0_1, %c0_2] : memref<1x64x64xf32, #tpu.memory_space<vmem>>, vector<1x64x64xf32>
    %4 = vector.shape_cast %3 : vector<1x64x64xf32> to vector<64x64xf32>
    %c0_3 = arith.constant 0 : index
    %c0_4 = arith.constant 0 : index
    %5 = vector.load %arg6[%c0_3, %c0_4] : memref<1x64xf32, #tpu.memory_space<vmem>>, vector<1x64xf32>
    %cst = arith.constant dense<0.000000e+00> : vector<64xf32>
    %6 = vector.multi_reduction <add>, %4, %cst [0] : vector<64x64xf32> to vector<64xf32>
    %7 = vector.shape_cast %6 : vector<64xf32> to vector<1x64xf32>
    %8 = arith.addf %5, %7 : vector<1x64xf32>
    %c0_5 = arith.constant 0 : index
    %c0_6 = arith.constant 0 : index
    %9 = vector.load %arg6[%c0_5, %c0_6] : memref<1x64xf32, #tpu.memory_space<vmem>>, vector<1x64xf32>
    tpu.vector_store %arg6[%c0_5, %c0_6], %8 {strides = array<i32>} : memref<1x64xf32, #tpu.memory_space<vmem>>, vector<1x64xf32>,
    %c0_7 = arith.constant 0 : index
    %c0_8 = arith.constant 0 : index
    %10 = vector.load %arg7[%c0_7, %c0_8] : memref<1x64xf32, #tpu.memory_space<vmem>>, vector<1x64xf32>
    %11 = arith.mulf %4, %4 : vector<64x64xf32>
    %cst_9 = arith.constant dense<0.000000e+00> : vector<64xf32>
    %12 = vector.multi_reduction <add>, %11, %cst_9 [0] : vector<64x64xf32> to vector<64xf32>
    %13 = vector.shape_cast %12 : vector<64xf32> to vector<1x64xf32>
    %14 = arith.addf %10, %13 : vector<1x64xf32>
    %c0_10 = arith.constant 0 : index
    %c0_11 = arith.constant 0 : index
    %15 = vector.load %arg7[%c0_10, %c0_11] : memref<1x64xf32, #tpu.memory_space<vmem>>, vector<1x64xf32>
    tpu.vector_store %arg7[%c0_10, %c0_11], %14 {strides = array<i32>} : memref<1x64xf32, #tpu.memory_space<vmem>>, vector<1x64xf32>,
    %c3_i32 = arith.constant 3 : i32
    %16 = arith.cmpi eq, %arg1, %c3_i32 : i32
    %17 = arith.extui %16 : i1 to i32
    %c0_i32_12 = arith.constant 0 : i32
    %18 = arith.cmpi ne, %17, %c0_i32_12 : i32
    scf.if %18 {
      %c0_13 = arith.constant 0 : index
      %c0_14 = arith.constant 0 : index
      %19 = vector.load %arg6[%c0_13, %c0_14] : memref<1x64xf32, #tpu.memory_space<vmem>>, vector<1x64xf32>
      %c0_15 = arith.constant 0 : index
      %c0_16 = arith.constant 0 : index
      %20 = vector.load %arg3[%c0_15, %c0_16] : memref<64x64xf32, #tpu.memory_space<vmem>>, vector<64x64xf32>
      %cst_17 = arith.constant dense<0.000000e+00> : vector<1x64xf32>
      %21 = tpu.matmul %19, %20, %cst_17 {dimension_numbers = #tpu.dot_dimension_numbers<[1], [0], [0], [1], [0, 0, 1, 1], [], []>} : vector<1x64xf32>, vector<64x64xf32>, vector<1x64xf32> -> vector<1x64xf32>
      %c0_18 = arith.constant 0 : index
      %c0_19 = arith.constant 0 : index
      %22 = vector.load %arg7[%c0_18, %c0_19] : memref<1x64xf32, #tpu.memory_space<vmem>>, vector<1x64xf32>
      %c0_20 = arith.constant 0 : index
      %c0_21 = arith.constant 0 : index
      %23 = vector.load %arg3[%c0_20, %c0_21] : memref<64x64xf32, #tpu.memory_space<vmem>>, vector<64x64xf32>
      %cst_22 = arith.constant dense<0.000000e+00> : vector<1x64xf32>
      %24 = tpu.matmul %22, %23, %cst_22 {dimension_numbers = #tpu.dot_dimension_numbers<[1], [0], [0], [1], [0, 0, 1, 1], [], []>} : vector<1x64xf32>, vector<64x64xf32>, vector<1x64xf32> -> vector<1x64xf32>
      %25 = arith.mulf %21, %21 : vector<1x64xf32>
      %26 = arith.subf %24, %25 : vector<1x64xf32>
      %cst_23 = arith.constant 0.000000e+00 : f32
      %27 = vector.broadcast %cst_23 : f32 to vector<1x64xf32>
      %28 = arith.maximumf %26, %27 : vector<1x64xf32>
      %c0_24 = arith.constant 0 : index
      %c0_25 = arith.constant 0 : index
      %c0_26 = arith.constant 0 : index
      %29 = vector.load %arg4[%c0_24, %c0_25, %c0_26] : memref<1x1x64xf32, #tpu.memory_space<vmem>>, vector<1x1x64xf32>
      %30 = vector.shape_cast %29 : vector<1x1x64xf32> to vector<1x64xf32>
      %31 = vector.shape_cast %21 : vector<1x64xf32> to vector<1x1x64xf32>
      tpu.vector_store %arg4[%c0_24, %c0_25, %c0_26], %31 {strides = array<i32>} : memref<1x1x64xf32, #tpu.memory_space<vmem>>, vector<1x1x64xf32>,
      %cst_27 = arith.constant 9.99999997E-7 : f32
      %32 = vector.broadcast %cst_27 : f32 to vector<1x64xf32>
      %33 = arith.addf %28, %32 : vector<1x64xf32>
      %34 = math.rsqrt %33 : vector<1x64xf32>
      %c0_28 = arith.constant 0 : index
      %c0_29 = arith.constant 0 : index
      %c0_30 = arith.constant 0 : index
      %35 = vector.load %arg5[%c0_28, %c0_29, %c0_30] : memref<1x1x64xf32, #tpu.memory_space<vmem>>, vector<1x1x64xf32>
      %36 = vector.shape_cast %35 : vector<1x1x64xf32> to vector<1x64xf32>
      %37 = vector.shape_cast %34 : vector<1x64xf32> to vector<1x1x64xf32>
      tpu.vector_store %arg5[%c0_28, %c0_29, %c0_30], %37 {strides = array<i32>} : memref<1x1x64xf32, #tpu.memory_space<vmem>>, vector<1x1x64xf32>,
    } else {
    }
    return
  }
  func.func @transform_0(%arg0: i32, %arg1: i32) -> (i32, i32, i32) {
    %c0_i32 = arith.constant 0 : i32
    %c0_i32_0 = arith.constant 0 : i32
    return %arg0, %arg1, %c0_i32 : i32, i32, i32
  }
  func.func @transform_1(%arg0: i32, %arg1: i32) -> (i32, i32) {
    %c0_i32 = arith.constant 0 : i32
    %c0_i32_0 = arith.constant 0 : i32
    %c0_i32_1 = arith.constant 0 : i32
    return %c0_i32, %c0_i32_0 : i32, i32
  }
  func.func @transform_2(%arg0: i32, %arg1: i32) -> (i32, i32, i32) {
    %c0_i32 = arith.constant 0 : i32
    %c0_i32_0 = arith.constant 0 : i32
    %c0_i32_1 = arith.constant 0 : i32
    return %arg0, %c0_i32, %c0_i32_0 : i32, i32, i32
  }
  func.func @transform_3(%arg0: i32, %arg1: i32) -> (i32, i32, i32) {
    %c0_i32 = arith.constant 0 : i32
    %c0_i32_0 = arith.constant 0 : i32
    %c0_i32_1 = arith.constant 0 : i32
    return %arg0, %c0_i32, %c0_i32_0 : i32, i32, i32
  }
}

</mosaic_0001>

<bundles_post_ra>
// kernel: tpu_custom_call.1
= control target key start
LH: loop header
LB: loop body
LE: loop exit
PB: predicated region body
PF: predicated region fallthrough
CT: control target
= control target key end

     0   :  { %6 = vsyncpa [#allocation3], 0  ;;  %s304_s0 = inlined_call_operand.hbm [shape: f32[8,128], index: 0, kind: input, shape index: {}]   ;;  %s305_s1 = inlined_call_operand.hbm [shape: f32[8,128], index: 1, kind: output, shape index: {}]  }
   0x1   :  { %7 = vsyncpa [#allocation4], 0  ;;  %s257_s6 = smov 0  }
   0x2 LB: > { %s144_s7 = sadd.s32 4294967295, %s243_s6   ;;  %p145_p0 = scmp.ge.s32.totalorder %s243_s6, 1  ;;  %s243_s6 = sphi %s257_s6, %s13_s6  }
   0x3   : > { %p60_p1 = scmp.lt.s32.totalorder %s243_s6, 3  ;;  %p269_p3 = scmp.eq.s32.totalorder %s144_s7, 0 }
   0x4   : > { %s245_s10 = smov [#allocation2]  }
   0x5   : > { %p265_p2 = pnand %p145_p0, %p60_p1  ;;  %s73_s11 = sshll.u32 %s245_s10, 4  ;;  %s74_s11 = int_to_ptr.vmem [resolvable:$true] %s73_s11 }
   0x6   : > { %s190_s12 = scalar_lea.vmem %s74_s11, 128  ;;  %p198_p10 = scmp.lt.s32.totalorder %s74_s11, %s74_s11 }
   0x7   : > { %p161_p4 = pneg %p265_p2  ;;  %p191_p7 = scmp.ne.s32.totalorder %s74_s11, %s190_s12 }
   0x8   : > { %p199_p11 = scmp.lt.s32.totalorder %s190_s12, %s190_s12 }
   0x9   : > { %p162_p5 = pnand %p269_p3, %p161_p4 }
   0xa   : > { %p200_p12 = por %p199_p11, %p198_p10 }
   0xb   : > { %p181_p6 = pneg %p162_p5 }
   0xd   : > { %p193_p8 = pnand %p191_p7, %p181_p6 }
   0xf   : > { %p194_p9 = pneg %p193_p8 }
  0x11   : > { %p201_p13 = pnand %p200_p12, %p194_p9 }
  0x13   : > { %204 = shalt.err (!%p201_p13)
}
  0x14   : > { %164 = dma.hbm_to_vmem [thread:$0]  (!%p162_p5), %s304_s0, 128, %s74_s11, [#allocation3]  }
  0x15   : > { %86 = sbr.rel (%p265_p2) target bundleno = 42 (0x2a), region = 24 }
  0x1a   : > { %234 = dma.done.wait (%p269_p3), [#allocation3], 128  }
  0x1b   : > { %236 = vsyncadd (%p269_p3), [#allocation3], 4294967168  ;;  %s246_s15 = smov [#allocation5]   ;;  %p286_p0 = scmp.eq.s32.totalorder %s144_s7, 1  ;;  %v96_v0 = vld [vmem:[#allocation2] sm:$0xff] }
  0x1c   : > { %s105_s16 = sshll.u32 %s246_s15, 4  ;;  %97 = vst [vmem:[#allocation5] sm:$0xff] %v96_v0  ;;  %s106_s16 = int_to_ptr.vmem [resolvable:$true] %s105_s16 }
  0x1d   : > { %s205_s18 = scalar_lea.vmem %s106_s16, 128  ;;  %p212_p5 = scmp.lt.s32.totalorder %s106_s16, %s106_s16 }
  0x1e   : > { %p206_p1 = scmp.ne.s32.totalorder %s106_s16, %s205_s18  ;;  %p213_p6 = scmp.lt.s32.totalorder %s205_s18, %s205_s18 }
  0x20   : > { %p207_p2 = pnand %p206_p1, %p286_p0  ;;  %p214_p7 = por %p213_p6, %p212_p5 }
  0x22   : > { %p208_p4 = pneg %p207_p2 }
  0x24   : > { %p215_p8 = pnand %p214_p7, %p208_p4 }
  0x26   : > { %218 = shalt.err (!%p215_p8)
}
  0x27   : > { %158 = dma.vmem_to_hbm [thread:$0]  (%p286_p0), %s106_s16, 128, %s305_s1, [#allocation4]  }
  0x28   : > { %238 = dma.done.wait (%p286_p0), [#allocation4], 128  }
  0x29   : > { %240 = vsyncadd (%p286_p0), [#allocation4], 4294967168 }
  0x2a PF: > { %s13_s6 = sadd.s32 1, %s243_s6  }
  0x2b   : > { %p10_p3 = scmp.ge.s32.totalorder %s13_s6, 4  }
  0x2d   :  { %12 = sbr.rel (!%p10_p3) target bundleno = 2 (0x2), region = 53 }
  0x32   :  { %118 = vsyncpa [#allocation3], 1 }
  0x33   :  { %120 = vsyncpa [#allocation3 + $0x1], 1 }
  0x34   :  { %121 = vsyncpa [#allocation4], 1 }
  0x35   :  { %123 = vsyncpa [#allocation4 + $0x1], 1 }

// kernel: tpu_custom_call.1
= control target key start
LH: loop header
LB: loop body
LE: loop exit
PB: predicated region body
PF: predicated region fallthrough
CT: control target
= control target key end

     0   :  { %9 = vsyncpa [#allocation5], 0  ;;  %s1089_s0 = inlined_call_operand.vmem [shape: f32[2,256,64], index: 0, kind: input, shape index: {}]   ;;  %s1090_s1 = inlined_call_operand.vmem [shape: f32[64,64], index: 1, kind: input, shape index: {}]   ;;  %s1091_s2 = inlined_call_operand.hbm [shape: f32[2,1,64], index: 2, kind: output, shape index: {0}]   ;;  %s1092_s3 = inlined_call_operand.hbm [shape: f32[2,1,64], index: 3, kind: output, shape index: {1}]  }
   0x1   :  { %11 = vsyncpa [#allocation5 + $0x1], 0 }
   0x2   :  { %12 = vsyncpa [#allocation7], 0 }
   0x3   :  { %14 = vsyncpa [#allocation7 + $0x1], 0  ;;  %s878_s12 = smov 0   ;;  %s880_s13 = smov 0  }
   0x4   :  { %s882_s14 = smov 0   ;;  %s884_s15 = smov 0  }
   0x5   :  { %s886_s16 = smov 0   ;;  %s888_s17 = smov 0  }
   0x6   :  { %s890_s18 = smov 0   ;;  %s892_s19 = smov 0  }
   0x7 LB: > { %s576_s20 = sadd.s32 4294967295, %s851_s19   ;;  %s577_s21 = sadd.s32 4294967294, %s851_s19   ;;  %s851_s19 = sphi %s892_s19, %s20_s19   ;;  %s847_s18 = sphi %s890_s18, %s1103_s18   ;;  %s843_s17 = sphi %s888_s17, %s1102_s17   ;;  %s839_s16 = sphi %s886_s16, %s1101_s16   ;;  %s835_s15 = sphi %s884_s15, %s1100_s15   ;;  %s831_s14 = sphi %s882_s14, %s1099_s14   ;;  %s827_s13 = sphi %s880_s13, %s1098_s13   ;;  %s823_s12 = sphi %s878_s12, %s1097_s12  }
   0x8   : > { %s29_s22 = sadd.s32 1, %s843_s17  ;;  %s32_s23 = sadd.s32 1, %s847_s18 }
   0x9   : > { %p30_p0 = scmp.ge.s32.totalorder %s29_s22, 4  ;;  %p98_p1 = scmp.ne.s32.totalorder %s831_s14, %s827_s13 }
   0xa   : > { %p99_p2 = scmp.eq.s32.totalorder %s576_s20, 7  ;;  %p104_p4 = scmp.ne.s32.totalorder %s827_s13, %s823_s12 }
   0xb   : > { %s1105_s22 = smov (%p30_p0, %s29_s22), 0  ;;  %s1107_s23 = smov (!%p30_p0, %s32_s23), %s847_s18 }
   0xc   : > { %p927_p3 = por %p99_p2, %p98_p1  ;;  %p34_p5 = scmp.ge.s32.totalorder %s1107_s23, 2 }
   0xd   : > { %p105_p6 = scmp.eq.s32.totalorder %s577_s21, 7  ;;  %p580_p7 = scmp.ge.s32.totalorder %s851_s19, 1 }
   0xe   : > { %p165_p8 = scmp.lt.s32.totalorder %s851_s19, 9  ;;  %s1109_s23 = smov (%p34_p5, %s1107_s23), 0 }
   0xf   : > { %p937_p9 = por %p105_p6, %p104_p4  ;;  %s85_s26 = ssub.s32 %s847_s18, %s1109_s23 }
  0x10   : > { %p166_p10 = pnand %p580_p7, %p165_p8  ;;  %s88_s27 = sadd.s32 1, %s831_s14 }
  0x11   : > { %p86_p11 = scmp.eq.s32.totalorder %s85_s26, 0  ;;  %s948_s29 = sand.u32 (!%p166_p10), 1, %s827_s13  }
  0x12   : > { %169 = sbr.rel (%p166_p10) target bundleno = 345 (0x159), region = 28  ;;  %s581_s30 = sshll.u32 (!%p166_p10), %s835_s15, 3 }
  0x13   : > { %s945_s28 = scalar_select %p86_p11, %s831_s14, %s88_s27  }
  0x14   : > { %p197_p12 = scmp.lt.s32.totalorder (!%p166_p10), %s839_s16, 1  ;;  %p199_p13 = scmp.lt.s32.totalorder (!%p166_p10), %s581_s30, 31 }
  0x15   : > { %s189_s11 = scalar_lea.vmem (!%p166_p10), [#allocation4], %s948_s29  ;;  %s1093_s20 = scalar_lea.vmem (!%p166_p10), [#allocation6], %s948_s29 }
  0x16   : > { %p584_p0 = scmp.ne.s32.totalorder (!%p166_p10), %s835_s15, 0 }
  0x17   : > { %s198_s4 = scalar_select %p197_p12, %s839_s16, 1 }
  0x18   : > { %s1111_s30 = smov (!%p199_p13, %s581_s30), 31  ;;  %209 = sbr.rel (%p584_p0) target bundleno = 31 (0x1f), region = 32 }
  0x19   : > { %s582_s5 = sshll.u32 %s198_s4, 5 }
  0x1a   : > { %s202_s6 = sadd.s32 %s582_s5, %s1111_s30 }
  0x1b   : > { %s583_s7 = sshll.u32 %s202_s6, 3 }
  0x1c   : > { %s956_s10 = scalar_lea.vmem %s1089_s0, %s583_s7 }
  0x1d   : > { %vm210_vm0 = vcmask 516096   ;;  %v853_v0 = vmov 0.0  }
  0x1e   : > { %211 = vst.msk [vmem:[#allocation2] sm:$0x1] %vm210_vm0, %v853_v0  ;;  %212 = vst.msk [vmem:[#allocation3] sm:$0x1] %vm210_vm0, %v853_v0 }
  0x1f PF: > { %v213_v1 = vld [vmem:[%s956_s10] sm:$0xff]  ;;  %v214_v2 = vld [vmem:[%s956_s10 + $0x8] sm:$0xff]  ;;  %v215_v3 = vld [vmem:[%s956_s10 + $0x10] sm:$0xff]  ;;  %vm222_vm1 = vcmask 523264   ;;  %vm245_vm2 = vcmask 516096   ;;  %p585_p1 = scmp.ne.s32.totalorder %s835_s15, 3 }
  0x20   : > { %v216_v4 = vld [vmem:[%s956_s10 + $0x18] sm:$0xff]  ;;  %v223_v5 = vsel %vm222_vm1, %v213_v1, 0.0  ;;  %v224_v6 = vsel %vm222_vm1, %v214_v2, 0.0  ;;  %v226_v7 = vsel %vm222_vm1, %v215_v3, 0.0  ;;  %v248_v8 = vmul.f32 %v213_v1, %v213_v1  ;;  %v217_v9 = vld [vmem:[%s956_s10 + $0x20] sm:$0xff]  ;;  %v218_v14 = vld [vmem:[%s956_s10 + $0x28] sm:$0xff] }
  0x21   : > { %v225_v10 = vadd.f32 %v224_v6, %v223_v5  ;;  %v249_v11 = vmul.f32 %v214_v2, %v214_v2  ;;  %v228_v12 = vsel %vm222_vm1, %v216_v4, 0.0  ;;  %v250_v13 = vmul.f32 %v215_v3, %v215_v3  ;;  %v219_v21 = vld [vmem:[%s956_s10 + $0x30] sm:$0xff]  ;;  %v220_v28 = vld [vmem:[%s956_s10 + $0x38] sm:$0xff] }
  0x22   : > { %v251_v16 = vmul.f32 %v216_v4, %v216_v4  ;;  %v230_v17 = vsel %vm222_vm1, %v217_v9, 0.0  ;;  %v252_v18 = vmul.f32 %v217_v9, %v217_v9  ;;  %v256_v19 = vsel %vm222_vm1, %v248_v8, 0.0 }
  0x23   : > { %v227_v15 = vadd.f32 %v226_v7, %v225_v10  ;;  %v257_v20 = vsel %vm222_vm1, %v249_v11, 0.0  ;;  %v259_v24 = vsel %vm222_vm1, %v250_v13, 0.0  ;;  %v232_v25 = vsel %vm222_vm1, %v218_v14, 0.0 }
  0x24   : > { %v258_v23 = vadd.f32 %v257_v20, %v256_v19  ;;  %v253_v26 = vmul.f32 %v218_v14, %v218_v14  ;;  %v261_v27 = vsel %vm222_vm1, %v251_v16, 0.0  ;;  %v234_v31 = vsel %vm222_vm1, %v219_v21, 0.0 }
  0x25   : > { %v229_v22 = vadd.f32 %v228_v12, %v227_v15  ;;  %v254_v32 = vmul.f32 %v219_v21, %v219_v21  ;;  %v263_v33 = vsel %vm222_vm1, %v252_v18, 0.0  ;;  %v236_v36 = vsel %vm222_vm1, %v220_v28, 0.0  ;;  %v221_v55 = vld [vmem:[#allocation2] sm:$0x1]  ;;  %v247_v60 = vld [vmem:[#allocation3] sm:$0x1] }
  0x26   : > { %v260_v30 = vadd.f32 %v259_v24, %v258_v23  ;;  %v255_v37 = vmul.f32 %v220_v28, %v220_v28  ;;  %v265_v38 = vsel %vm222_vm1, %v253_v26, 0.0 }
  0x27   : > { %v231_v29 = vadd.f32 %v230_v17, %v229_v22  ;;  %v267_v41 = vsel %vm222_vm1, %v254_v32, 0.0 }
  0x28   : > { %v262_v35 = vadd.f32 %v261_v27, %v260_v30  ;;  %v269_v44 = vsel %vm222_vm1, %v255_v37, 0.0 }
  0x29   : > { %v233_v34 = vadd.f32 %v232_v25, %v231_v29 }
  0x2a   : > { %v264_v40 = vadd.f32 %v263_v33, %v262_v35 }
  0x2b   : > { %v235_v39 = vadd.f32 %v234_v31, %v233_v34 }
  0x2c   : > { %v266_v43 = vadd.f32 %v265_v38, %v264_v40 }
  0x2d   : > { %v237_v42 = vadd.f32 %v236_v36, %v235_v39 }
  0x2e   : > { %v268_v46 = vadd.f32 %v267_v41, %v266_v43 }
  0x2f   : > { %v238_v45 = vrot.slane %v237_v42, 4 }
  0x30   : > { %v270_v48 = vadd.f32 %v269_v44, %v268_v46 }
  0x31   : > { %v239_v47 = vadd.f32 %v238_v45, %v237_v42 }
  0x32   : > { %v271_v50 = vrot.slane %v270_v48, 4 }
  0x33   : > { %v240_v49 = vrot.slane %v239_v47, 2 }
  0x34   : > { %v272_v52 = vadd.f32 %v271_v50, %v270_v48 }
  0x35   : > { %v241_v51 = vadd.f32 %v240_v49, %v239_v47 }
  0x36   : > { %v273_v54 = vrot.slane %v272_v52, 2 }
  0x37   : > { %v242_v53 = vrot.slane %v241_v51, 1 }
  0x38   : > { %v274_v57 = vadd.f32 %v273_v54, %v272_v52 }
  0x39   : > { %v243_v56 = vadd.f32 %v242_v53, %v241_v51 }
  0x3a   : > { %v275_v59 = vrot.slane %v274_v57, 1 }
  0x3b   : > { %v244_v58 = vadd.f32 %v243_v56, %v221_v55 }
  0x3c   : > { %v276_v61 = vadd.f32 %v275_v59, %v274_v57  ;;  %282 = sbr.rel (%p585_p1) target bundleno = 299 (0x12b), region = 36 }
  0x3d   : > { %246 = vst.msk [vmem:[#allocation2] sm:$0x1] %vm245_vm2, %v244_v58 }
  0x3e   : > { %v277_v62 = vadd.f32 %v276_v61, %v247_v60 }
  0x40   : > { %278 = vst.msk [vmem:[#allocation3] sm:$0x1] %vm245_vm2, %v277_v62 }
  0x41   : > { %v291_v63 = vld [vmem:[%s1090_s1 + $0x38] sm:$0xff]  ;;  %v854_v0 = vmov 0.0   ;;  %v290_v1 = vld [vmem:[%s1090_s1 + $0x30] sm:$0xff]  ;;  %v289_v2 = vld [vmem:[%s1090_s1 + $0x28] sm:$0xff]  ;;  %vm855_vm3 = vmmov 0  }
  0x42   : > { %610 = vmatprep.subr.mxu0 %v854_v0  ;;  %629 = vmatprep.subr.mxu1 %v854_v0  ;;  %v288_v3 = vld [vmem:[%s1090_s1 + $0x20] sm:$0xff]  ;;  %v287_v4 = vld [vmem:[%s1090_s1 + $0x18] sm:$0xff]  ;;  %v286_v5 = vld [vmem:[%s1090_s1 + $0x10] sm:$0xff] }
  0x43   : > { %611 = vmatpush3.msra.mxu0 %v291_v63  ;;  %630 = vmatpush3.msra.mxu1 %v291_v63  ;;  %v285_v6 = vld [vmem:[%s1090_s1 + $0x8] sm:$0xff]  ;;  %v284_v7 = vld [vmem:[%s1090_s1] sm:$0xff] }
  0x44   : > { %612 = vmatprep.subr.mxu0 %v854_v0  ;;  %631 = vmatprep.subr.mxu1 %v854_v0  ;;  %v283_v8 = vld [vmem:[#allocation2] sm:$0x1] }
  0x45   : > { %613 = vmatpush3.msra.mxu0 %v290_v1  ;;  %632 = vmatpush3.msra.mxu1 %v290_v1 }
  0x46   : > { %614 = vmatprep.subr.mxu0 %v854_v0  ;;  %633 = vmatprep.subr.mxu1 %v854_v0 }
  0x47   : > { %615 = vmatpush3.msra.mxu0 %v289_v2  ;;  %634 = vmatpush3.msra.mxu1 %v289_v2  ;;  %v365_v9 = vld [vmem:[#allocation3] sm:$0x1] }
  0x48   : > { %616 = vmatprep.subr.mxu0 %v854_v0  ;;  %635 = vmatprep.subr.mxu1 %v854_v0 }
  0x49   : > { %617 = vmatpush3.msra.mxu0 %v288_v3  ;;  %636 = vmatpush3.msra.mxu1 %v288_v3 }
  0x4a   : > { %618 = vmatprep.subr.mxu0 %v854_v0  ;;  %637 = vmatprep.subr.mxu1 %v854_v0 }
  0x4b   : > { %619 = vmatpush3.msra.mxu0 %v287_v4  ;;  %638 = vmatpush3.msra.mxu1 %v287_v4 }
  0x4c   : > { %620 = vmatprep.subr.mxu0 %v854_v0  ;;  %639 = vmatprep.subr.mxu1 %v854_v0 }
  0x4d   : > { %621 = vmatpush3.msra.mxu0 %v286_v5  ;;  %640 = vmatpush3.msra.mxu1 %v286_v5 }
  0x4e   : > { %622 = vmatprep.subr.mxu0 %v854_v0  ;;  %641 = vmatprep.subr.mxu1 %v854_v0 }
  0x4f   : > { %623 = vmatpush3.msra.mxu0 %v285_v6  ;;  %642 = vmatpush3.msra.mxu1 %v285_v6 }
  0x50   : > { %624 = vmatprep.subr.mxu0 %v854_v0  ;;  %643 = vmatprep.subr.mxu1 %v854_v0 }
  0x51   : > { %625 = vmatpush3.msra.mxu0 %v284_v7  ;;  %626 = vmatprep.mubr.msk.f32.mxu0 %vm855_vm3, %v854_v0 }
  0x52   : > { %644 = vmatpush3.msra.mxu1 %v284_v7  ;;  %645 = vmatprep.mubr.msk.f32.mxu1 %vm855_vm3, %v854_v0 }
  0x53   : > { %627 = vmatmul.mubr.msk.f32.vlgmr.msra.gmra.mxu0 %vm222_vm1, %v283_v8  ;;  %646 = vmatmul.mubr.msk.f32.vlgmr.msra.gmra.mxu1 %vm222_vm1, %v365_v9 }
 0x113   : > { %v361_v10 = vpop.f32.mrf.mxu0  ;;  %v435_v11 = vpop.f32.mrf.mxu1 }
 0x114   : > { %v439_v12 = vmul.f32 %v361_v10, %v361_v10  ;;  %442 = vst.msk [vmem:[%s189_s11] sm:$0x1] %vm245_vm2, %v361_v10 }
 0x115   : > { %v628_v13 = vpop.f32.mrf.mxu0  ;;  %v647_v14 = vpop.f32.mrf.mxu1 }
 0x116   : > { %v440_v15 = vsub.f32 %v435_v11, %v439_v12 }
 0x118   : > { %v441_v16 = vmax.f32 %v440_v15, 0.0 }
 0x11a   : > { %v443_v17 = vadd.f32 1e-06, %v441_v16 }
 0x11c   : > { %727 = vrsqrt.f32 %v443_v17 }
 0x129   : > { %v728_v18 = vpop.eup %727 }
 0x12a   : > { %445 = vst.msk [vmem:[%s1093_s20] sm:$0x1] %vm245_vm2, %v728_v18 }
 0x12b PF: > { %s588_s4 = sshll.u32 %s839_s16, 4  ;;  %s463_s7 = sshll.u32 %s189_s11, 4  ;;  %s464_s7 = int_to_ptr.vmem [resolvable:$true] %s463_s7 }
 0x12c   : > { %s461_s6 = scalar_lea.hbm %s1091_s2, %s588_s4  ;;  %s447_s8 = scalar_lea.sflag [#allocation5], %s948_s29 }
 0x12d   : > { %s729_s9 = scalar_lea.vmem %s464_s7, 16  ;;  %s856_s10 = smov [#allocation4]  }
 0x12e   : > { %p730_p2 = scmp.ne.s32.totalorder %s464_s7, %s729_s9  ;;  %s733_s21 = sshll.u32 %s856_s10, 4  ;;  %s734_s21 = int_to_ptr.vmem [resolvable:$false] %s733_s21 }
 0x12f   : > { %s735_s26 = scalar_lea.vmem %s734_s21, 32  ;;  %p736_p6 = scmp.lt.s32.totalorder %s464_s7, %s734_s21 }
 0x130   : > { %p731_p4 = pnand %p730_p2, %p927_p3  ;;  %p737_p7 = scmp.lt.s32.totalorder %s735_s26, %s729_s9 }
 0x132   : > { %p732_p5 = pneg %p731_p4  ;;  %p738_p8 = por %p737_p7, %p736_p6 }
 0x134   : > { %p739_p10 = pnand %p738_p8, %p732_p5 }
 0x136   : > { %742 = shalt.err (!%p739_p10)
}
 0x137   : > { %s743_s27 = scalar_lea.hbm %s461_s6, 16  ;;  %s747_s5 = scalar_lea.hbm %s1091_s2, 32 }
 0x138   : > { %p744_p11 = scmp.ne.s32.totalorder %s461_s6, %s743_s27  ;;  %p748_p0 = scmp.lt.s32.totalorder %s461_s6, %s1091_s2 }
 0x139   : > { %p749_p1 = scmp.lt.s32.totalorder %s747_s5, %s743_s27 }
 0x13a   : > { %p745_p12 = pnand %p744_p11, %p927_p3 }
 0x13b   : > { %p750_p2 = por %p749_p1, %p748_p0 }
 0x13c   : > { %p746_p13 = pneg %p745_p12 }
 0x13e   : > { %p751_p4 = pnand %p750_p2, %p746_p13 }
 0x140   : > { %754 = shalt.err (!%p751_p4)
}
 0x141   : > { %648 = dma.vmem_to_hbm [thread:$0]  (%p927_p3), %s464_s7, 16, %s461_s6, %s447_s8  }
 0x142   : > { %s474_s21 = scalar_lea.hbm %s1092_s3, %s588_s4  ;;  %s1096_s26 = scalar_lea.vmem [#allocation6], %s948_s29 }
 0x143   : > { %s476_s11 = sshll.u32 %s1096_s26, 4  ;;  %s451_s20 = scalar_lea.sflag [#allocation7], %s948_s29  ;;  %s477_s11 = int_to_ptr.vmem [resolvable:$true] %s476_s11 }
 0x144   : > { %s755_s27 = scalar_lea.vmem %s477_s11, 16  ;;  %s857_s30 = smov [#allocation6]  }
 0x145   : > { %p756_p5 = scmp.ne.s32.totalorder %s477_s11, %s755_s27  ;;  %s759_s5 = sshll.u32 %s857_s30, 4  ;;  %s760_s5 = int_to_ptr.vmem [resolvable:$false] %s759_s5 }
 0x146   : > { %s761_s15 = scalar_lea.vmem %s760_s5, 32  ;;  %p762_p8 = scmp.lt.s32.totalorder %s477_s11, %s760_s5 }
 0x147   : > { %p757_p6 = pnand %p756_p5, %p927_p3  ;;  %p763_p10 = scmp.lt.s32.totalorder %s761_s15, %s755_s27 }
 0x149   : > { %p758_p7 = pneg %p757_p6  ;;  %p764_p11 = por %p763_p10, %p762_p8 }
 0x14b   : > { %p765_p12 = pnand %p764_p11, %p758_p7 }
 0x14d   : > { %768 = shalt.err (!%p765_p12)
}
 0x14e   : > { %s769_s16 = scalar_lea.hbm %s474_s21, 16  ;;  %s773_s6 = scalar_lea.hbm %s1092_s3, 32 }
 0x14f   : > { %p770_p13 = scmp.ne.s32.totalorder %s474_s21, %s769_s16  ;;  %p774_p2 = scmp.lt.s32.totalorder %s474_s21, %s1092_s3 }
 0x150   : > { %p775_p4 = scmp.lt.s32.totalorder %s773_s6, %s769_s16 }
 0x151   : > { %p771_p0 = pnand %p770_p13, %p927_p3 }
 0x152   : > { %p776_p5 = por %p775_p4, %p774_p2 }
 0x153   : > { %p772_p1 = pneg %p771_p0 }
 0x155   : > { %p777_p6 = pnand %p776_p5, %p772_p1 }
 0x157   : > { %780 = shalt.err (!%p777_p6)
}
 0x158   : > { %649 = dma.vmem_to_hbm [thread:$0]  (%p927_p3), %s477_s11, 16, %s474_s21, %s451_s20  }
 0x159 PF: > { %p659_p7 = scmp.ge.s32.totalorder %s851_s19, 2  ;;  %s488_s9 = sand.u32 1, %s823_s12  }
 0x15a   : > { %s489_s10 = scalar_lea.sflag [#allocation5], %s488_s9 }
 0x15b   : > { %p653_p8 = pnand %p659_p7, %p937_p9 }
 0x15d   : > { %p654_p10 = pneg %p653_p8 }
 0x15f   : > { %814 = dma.done.wait (%p654_p10), %s489_s10, 16  }
 0x160   : > { %816 = vsyncadd (%p654_p10), %s489_s10, 4294967280  ;;  %s497_s26 = scalar_lea.sflag [#allocation7], %s488_s9 }
 0x161   : > { %818 = dma.done.wait (%p654_p10), %s497_s26, 16  }
 0x162   : > { %820 = vsyncadd (%p654_p10), %s497_s26, 4294967280  ;;  %s20_s19 = sadd.s32 1, %s851_s19   ;;  %s1097_s12 = smov %s827_s13 }
 0x163   : > { %p17_p11 = scmp.ge.s32.totalorder %s20_s19, 10   ;;  %s1098_s13 = smov %s831_s14 }
 0x164   : > { %s1099_s14 = smov %s945_s28  ;;  %s1100_s15 = smov %s843_s17 }
 0x165   : > { %s1101_s16 = smov %s847_s18  ;;  %s1102_s17 = smov %s1105_s22 }
 0x166   : > { %s1103_s18 = smov %s1109_s23  ;;  %19 = sbr.rel (!%p17_p11) target bundleno = 7 (0x7), region = 88 }
 0x16b   :  { %501 = vsyncpa [#allocation5], 1 }
 0x16c   :  { %503 = vsyncpa [#allocation5 + $0x1], 1 }
 0x16d   :  { %504 = vsyncpa [#allocation7], 1 }
 0x16e   :  { %506 = vsyncpa [#allocation7 + $0x1], 1 }

</bundles_post_ra>
